<compile_context>
chip_gen: v7x
topology: tpu7x:2x2x1
jax: 0.10.0
libtpu: 0.0.40
codegen_flags: <defaults>
</compile_context>

<pallas_src>
import functools

import jax
import jax.numpy as jnp
from jax import lax
from jax.experimental import pallas as pl
from jax.experimental.pallas import tpu as pltpu


def _normalize_one(x_ref, wb_ref, o_ref, n, eps):
    """Group-norm one lane-dense tensor.

    x_ref : (N*G, L)   one row per (sample, group), L = Cg*S
    wb_ref: (2, G, L)  row 0 = weight pattern, row 1 = bias pattern (one period)
    o_ref : (N*G, L)
    """
    x = x_ref[...].astype(jnp.float32)                    # (N*G, L)
    inv_len = 1.0 / x.shape[-1]
    mean = jnp.sum(x, axis=-1, keepdims=True) * inv_len   # (N*G, 1)
    xc = x - mean
    var = jnp.sum(xc * xc, axis=-1, keepdims=True) * inv_len
    inv = lax.rsqrt(var + eps)                            # EUP slot, effectively free

    w = wb_ref[0]                                         # (G, L)
    b = wb_ref[1]
    if n > 1:  # replicate one period across the batch: cheap sublane concat in VMEM
        w = jnp.concatenate([w] * n, axis=0)              # (N*G, L)
        b = jnp.concatenate([b] * n, axis=0)

    o_ref[...] = (xc * inv * w + b).astype(o_ref.dtype)


def _fused_group_norm_kernel(x_ref, wbx_ref, y_ref, wby_ref, z_ref, wbz_ref,
                             ox_ref, oy_ref, oz_ref,
                             *, n_x, n_y, n_z, eps_x, eps_y, eps_z):
    _normalize_one(x_ref, wbx_ref, ox_ref, n_x, eps_x)
    _normalize_one(y_ref, wby_ref, oy_ref, n_y, eps_y)
    _normalize_one(z_ref, wbz_ref, oz_ref, n_z, eps_z)


def _prep(x, num_groups, weight, bias):
    """x -> lane-dense (N*G, Cg*S); affine params -> one-period packed (2, G, Cg*S)."""
    N, C = int(x.shape[0]), int(x.shape[1])
    S = 1
    for d in x.shape[2:]:
        S *= int(d)
    G = int(num_groups)
    Cg = C // G
    rows, L = N * G, Cg * S
    x2 = x.reshape(rows, L)
    # One period of the per-row affine pattern (tiny arrays, <= 8 KiB).
    w1 = jnp.broadcast_to(
        weight.astype(jnp.float32).reshape(G, Cg, 1), (G, Cg, S)).reshape(G, L)
    b1 = jnp.broadcast_to(
        bias.astype(jnp.float32).reshape(G, Cg, 1), (G, Cg, S)).reshape(G, L)
    wb = jnp.stack([w1, b1], axis=0)                      # (2, G, L)
    return x2, wb, N


def model_forward(x, y, z, w3, b3, w4, b4, w5, b5):
    """Matches Model.forward: three group_norms (groups 4/6/8, eps 1e-5/1e-5/0.01)."""
    x2, wbx, nx = _prep(x, 4, w3, b3)
    y2, wby, ny = _prep(y, 6, w4, b4)
    z2, wbz, nz = _prep(z, 8, w5, b5)

    vmem = lambda: pl.BlockSpec(memory_space=pltpu.MemorySpace.VMEM)

    ox2, oy2, oz2 = pl.pallas_call(
        functools.partial(_fused_group_norm_kernel,
                          n_x=nx, n_y=ny, n_z=nz,
                          eps_x=1e-5, eps_y=1e-5, eps_z=0.01),
        out_shape=(
            jax.ShapeDtypeStruct(x2.shape, x.dtype),
            jax.ShapeDtypeStruct(y2.shape, y.dtype),
            jax.ShapeDtypeStruct(z2.shape, z.dtype),
        ),
        in_specs=[vmem() for _ in range(6)],
        out_specs=(vmem(), vmem(), vmem()),
        input_output_aliases={0: 0, 2: 1, 4: 2},   # x2->ox2, y2->oy2, z2->oz2
    )(x2, wbx, y2, wby, z2, wbz)

    return ox2.reshape(x.shape), oy2.reshape(y.shape), oz2.reshape(z.shape)


def _group_norm_ref(x, num_groups, weight, bias, eps=1e-5):
    """Pure-JAX reference matching torch.nn.functional.group_norm semantics."""
    N, C = x.shape[0], x.shape[1]
    xg = x.reshape(N, num_groups, -1)
    mean = xg.mean(axis=2, keepdims=True)
    var = xg.var(axis=2, keepdims=True)  # biased variance, like PyTorch
    xn = ((xg - mean) / jnp.sqrt(var + eps)).reshape(x.shape)
    bshape = (1, C) + (1,) * (x.ndim - 2)
    return xn * weight.reshape(bshape) + bias.reshape(bshape)


if __name__ == "__main__":
    key = jax.random.PRNGKey(0)
    ks = jax.random.split(key, 9)

    # Inputs (channel counts fixed by the module: 16 / 12 / 32).
    x = jax.random.uniform(ks[0], (2, 16, 8, 8), jnp.float32)
    y = jax.random.uniform(ks[1], (2, 12, 16), jnp.float32)
    z = jax.random.uniform(ks[2], (2, 32, 6, 8), jnp.float32)

    # Deterministic parameters, matching torch.rand(...) shapes in __init__.
    w3 = jax.random.uniform(ks[3], (16,), jnp.float32)
    b3 = jax.random.uniform(ks[4], (16,), jnp.float32)
    w4 = jax.random.uniform(ks[5], (12,), jnp.float32)
    b4 = jax.random.uniform(ks[6], (12,), jnp.float32)
    w5 = jax.random.uniform(ks[7], (32,), jnp.float32)
    b5 = jax.random.uniform(ks[8], (32,), jnp.float32)

    fwd = jax.jit(model_forward)
    ox, oy, oz = fwd(x, y, z, w3, b3, w4, b4, w5, b5)
    jax.block_until_ready((ox, oy, oz))

    # Correctness check against plain-JAX group_norm reference.
    rx = _group_norm_ref(x, 4, w3, b3)
    ry = _group_norm_ref(y, 6, w4, b4)
    rz = _group_norm_ref(z, 8, w5, b5, eps=0.01)
    assert jnp.allclose(ox, rx, atol=1e-4, rtol=1e-4), "x mismatch"
    assert jnp.allclose(oy, ry, atol=1e-4, rtol=1e-4), "y mismatch"
    assert jnp.allclose(oz, rz, atol=1e-4, rtol=1e-4), "z mismatch"

    print("KERNEL_OK")
</pallas_src>

<mosaic_0001>
module attributes {stable_mosaic.version = 11 : i64} {
  func.func @_fused_group_norm_kernel(%arg0: memref<8x256xf32, #tpu.memory_space<vmem>>, %arg1: memref<2x4x256xf32, #tpu.memory_space<vmem>>, %arg2: memref<12x32xf32, #tpu.memory_space<vmem>>, %arg3: memref<2x6x32xf32, #tpu.memory_space<vmem>>, %arg4: memref<16x192xf32, #tpu.memory_space<vmem>>, %arg5: memref<2x8x192xf32, #tpu.memory_space<vmem>>, %arg6: memref<8x256xf32, #tpu.memory_space<vmem>>, %arg7: memref<12x32xf32, #tpu.memory_space<vmem>>, %arg8: memref<16x192xf32, #tpu.memory_space<vmem>>) attributes {dimension_semantics = [], scalar_prefetch = 0 : i64, scratch_operands = 0 : i64, tpu.core_type = #tpu.core_type<tc>} {
    %c0 = arith.constant 0 : index
    %c0_0 = arith.constant 0 : index
    %0 = vector.load %arg0[%c0, %c0_0] : memref<8x256xf32, #tpu.memory_space<vmem>>, vector<8x256xf32>
    %cst = arith.constant dense<0.000000e+00> : vector<8xf32>
    %1 = vector.multi_reduction <add>, %0, %cst [1] : vector<8x256xf32> to vector<8xf32>
    %2 = vector.shape_cast %1 : vector<8xf32> to vector<8x1xf32>
    %cst_1 = arith.constant 3.906250e-03 : f32
    %3 = vector.broadcast %cst_1 : f32 to vector<8x1xf32>
    %4 = arith.mulf %2, %3 : vector<8x1xf32>
    %5 = vector.broadcast %4 : vector<8x1xf32> to vector<8x256xf32>
    %6 = arith.subf %0, %5 : vector<8x256xf32>
    %7 = arith.mulf %6, %6 : vector<8x256xf32>
    %cst_2 = arith.constant dense<0.000000e+00> : vector<8xf32>
    %8 = vector.multi_reduction <add>, %7, %cst_2 [1] : vector<8x256xf32> to vector<8xf32>
    %9 = vector.shape_cast %8 : vector<8xf32> to vector<8x1xf32>
    %cst_3 = arith.constant 3.906250e-03 : f32
    %10 = vector.broadcast %cst_3 : f32 to vector<8x1xf32>
    %11 = arith.mulf %9, %10 : vector<8x1xf32>
    %cst_4 = arith.constant 9.99999974E-6 : f32
    %12 = vector.broadcast %cst_4 : f32 to vector<8x1xf32>
    %13 = arith.addf %11, %12 : vector<8x1xf32>
    %14 = math.rsqrt %13 : vector<8x1xf32>
    %c0_5 = arith.constant 0 : index
    %c0_6 = arith.constant 0 : index
    %c0_7 = arith.constant 0 : index
    %15 = vector.load %arg1[%c0_5, %c0_6, %c0_7] : memref<2x4x256xf32, #tpu.memory_space<vmem>>, vector<1x4x256xf32>
    %16 = vector.shape_cast %15 : vector<1x4x256xf32> to vector<4x256xf32>
    %c1 = arith.constant 1 : index
    %c0_8 = arith.constant 0 : index
    %c0_9 = arith.constant 0 : index
    %17 = vector.load %arg1[%c1, %c0_8, %c0_9] : memref<2x4x256xf32, #tpu.memory_space<vmem>>, vector<1x4x256xf32>
    %18 = vector.shape_cast %17 : vector<1x4x256xf32> to vector<4x256xf32>
    %19 = tpu.concatenate %16, %16 in 0 : vector<4x256xf32>, vector<4x256xf32> -> vector<8x256xf32>
    %20 = tpu.concatenate %18, %18 in 0 : vector<4x256xf32>, vector<4x256xf32> -> vector<8x256xf32>
    %21 = vector.broadcast %14 : vector<8x1xf32> to vector<8x256xf32>
    %22 = arith.mulf %6, %21 : vector<8x256xf32>
    %23 = arith.mulf %22, %19 : vector<8x256xf32>
    %24 = arith.addf %23, %20 : vector<8x256xf32>
    %c0_10 = arith.constant 0 : index
    %c0_11 = arith.constant 0 : index
    %25 = vector.load %arg6[%c0_10, %c0_11] : memref<8x256xf32, #tpu.memory_space<vmem>>, vector<8x256xf32>
    tpu.vector_store %arg6[%c0_10, %c0_11], %24 {strides = array<i32>} : memref<8x256xf32, #tpu.memory_space<vmem>>, vector<8x256xf32>,
    %c0_12 = arith.constant 0 : index
    %c0_13 = arith.constant 0 : index
    %26 = vector.load %arg2[%c0_12, %c0_13] : memref<12x32xf32, #tpu.memory_space<vmem>>, vector<12x32xf32>
    %cst_14 = arith.constant dense<0.000000e+00> : vector<12xf32>
    %27 = vector.multi_reduction <add>, %26, %cst_14 [1] : vector<12x32xf32> to vector<12xf32>
    %28 = vector.shape_cast %27 : vector<12xf32> to vector<12x1xf32>
    %cst_15 = arith.constant 3.125000e-02 : f32
    %29 = vector.broadcast %cst_15 : f32 to vector<12x1xf32>
    %30 = arith.mulf %28, %29 : vector<12x1xf32>
    %31 = vector.broadcast %30 : vector<12x1xf32> to vector<12x32xf32>
    %32 = arith.subf %26, %31 : vector<12x32xf32>
    %33 = arith.mulf %32, %32 : vector<12x32xf32>
    %cst_16 = arith.constant dense<0.000000e+00> : vector<12xf32>
    %34 = vector.multi_reduction <add>, %33, %cst_16 [1] : vector<12x32xf32> to vector<12xf32>
    %35 = vector.shape_cast %34 : vector<12xf32> to vector<12x1xf32>
    %cst_17 = arith.constant 3.125000e-02 : f32
    %36 = vector.broadcast %cst_17 : f32 to vector<12x1xf32>
    %37 = arith.mulf %35, %36 : vector<12x1xf32>
    %cst_18 = arith.constant 9.99999974E-6 : f32
    %38 = vector.broadcast %cst_18 : f32 to vector<12x1xf32>
    %39 = arith.addf %37, %38 : vector<12x1xf32>
    %40 = math.rsqrt %39 : vector<12x1xf32>
    %c0_19 = arith.constant 0 : index
    %c0_20 = arith.constant 0 : index
    %c0_21 = arith.constant 0 : index
    %41 = vector.load %arg3[%c0_19, %c0_20, %c0_21] : memref<2x6x32xf32, #tpu.memory_space<vmem>>, vector<1x6x32xf32>
    %42 = vector.shape_cast %41 : vector<1x6x32xf32> to vector<6x32xf32>
    %c1_22 = arith.constant 1 : index
    %c0_23 = arith.constant 0 : index
    %c0_24 = arith.constant 0 : index
    %43 = vector.load %arg3[%c1_22, %c0_23, %c0_24] : memref<2x6x32xf32, #tpu.memory_space<vmem>>, vector<1x6x32xf32>
    %44 = vector.shape_cast %43 : vector<1x6x32xf32> to vector<6x32xf32>
    %45 = tpu.concatenate %42, %42 in 0 : vector<6x32xf32>, vector<6x32xf32> -> vector<12x32xf32>
    %46 = tpu.concatenate %44, %44 in 0 : vector<6x32xf32>, vector<6x32xf32> -> vector<12x32xf32>
    %47 = vector.broadcast %40 : vector<12x1xf32> to vector<12x32xf32>
    %48 = arith.mulf %32, %47 : vector<12x32xf32>
    %49 = arith.mulf %48, %45 : vector<12x32xf32>
    %50 = arith.addf %49, %46 : vector<12x32xf32>
    %c0_25 = arith.constant 0 : index
    %c0_26 = arith.constant 0 : index
    %51 = vector.load %arg7[%c0_25, %c0_26] : memref<12x32xf32, #tpu.memory_space<vmem>>, vector<12x32xf32>
    tpu.vector_store %arg7[%c0_25, %c0_26], %50 {strides = array<i32>} : memref<12x32xf32, #tpu.memory_space<vmem>>, vector<12x32xf32>,
    %c0_27 = arith.constant 0 : index
    %c0_28 = arith.constant 0 : index
    %52 = vector.load %arg4[%c0_27, %c0_28] : memref<16x192xf32, #tpu.memory_space<vmem>>, vector<16x192xf32>
    %cst_29 = arith.constant dense<0.000000e+00> : vector<16xf32>
    %53 = vector.multi_reduction <add>, %52, %cst_29 [1] : vector<16x192xf32> to vector<16xf32>
    %54 = vector.shape_cast %53 : vector<16xf32> to vector<16x1xf32>
    %cst_30 = arith.constant 0.00520833349 : f32
    %55 = vector.broadcast %cst_30 : f32 to vector<16x1xf32>
    %56 = arith.mulf %54, %55 : vector<16x1xf32>
    %57 = vector.broadcast %56 : vector<16x1xf32> to vector<16x192xf32>
    %58 = arith.subf %52, %57 : vector<16x192xf32>
    %59 = arith.mulf %58, %58 : vector<16x192xf32>
    %cst_31 = arith.constant dense<0.000000e+00> : vector<16xf32>
    %60 = vector.multi_reduction <add>, %59, %cst_31 [1] : vector<16x192xf32> to vector<16xf32>
    %61 = vector.shape_cast %60 : vector<16xf32> to vector<16x1xf32>
    %cst_32 = arith.constant 0.00520833349 : f32
    %62 = vector.broadcast %cst_32 : f32 to vector<16x1xf32>
    %63 = arith.mulf %61, %62 : vector<16x1xf32>
    %cst_33 = arith.constant 0.00999999977 : f32
    %64 = vector.broadcast %cst_33 : f32 to vector<16x1xf32>
    %65 = arith.addf %63, %64 : vector<16x1xf32>
    %66 = math.rsqrt %65 : vector<16x1xf32>
    %c0_34 = arith.constant 0 : index
    %c0_35 = arith.constant 0 : index
    %c0_36 = arith.constant 0 : index
    %67 = vector.load %arg5[%c0_34, %c0_35, %c0_36] : memref<2x8x192xf32, #tpu.memory_space<vmem>>, vector<1x8x192xf32>
    %68 = vector.shape_cast %67 : vector<1x8x192xf32> to vector<8x192xf32>
    %c1_37 = arith.constant 1 : index
    %c0_38 = arith.constant 0 : index
    %c0_39 = arith.constant 0 : index
    %69 = vector.load %arg5[%c1_37, %c0_38, %c0_39] : memref<2x8x192xf32, #tpu.memory_space<vmem>>, vector<1x8x192xf32>
    %70 = vector.shape_cast %69 : vector<1x8x192xf32> to vector<8x192xf32>
    %71 = tpu.concatenate %68, %68 in 0 : vector<8x192xf32>, vector<8x192xf32> -> vector<16x192xf32>
    %72 = tpu.concatenate %70, %70 in 0 : vector<8x192xf32>, vector<8x192xf32> -> vector<16x192xf32>
    %73 = vector.broadcast %66 : vector<16x1xf32> to vector<16x192xf32>
    %74 = arith.mulf %58, %73 : vector<16x192xf32>
    %75 = arith.mulf %74, %71 : vector<16x192xf32>
    %76 = arith.addf %75, %72 : vector<16x192xf32>
    %c0_40 = arith.constant 0 : index
    %c0_41 = arith.constant 0 : index
    %77 = vector.load %arg8[%c0_40, %c0_41] : memref<16x192xf32, #tpu.memory_space<vmem>>, vector<16x192xf32>
    tpu.vector_store %arg8[%c0_40, %c0_41], %76 {strides = array<i32>} : memref<16x192xf32, #tpu.memory_space<vmem>>, vector<16x192xf32>,
    return
  }
}

</mosaic_0001>

<bundles_post_ra>
// kernel: model_forward.1
= control target key start
LH: loop header
LB: loop body
LE: loop exit
PB: predicated region body
PF: predicated region fallthrough
CT: control target
= control target key end

     0   :  { %vm120_vm0 = vcmask 523264   ;;  %vm70_vm1 = vcmask 261120   ;;  %vm74_vm2 = vcmask 257024   ;;  %vm102_vm3 = vcmask 1045504   ;;  %s372_s0 = inlined_call_operand.vmem [shape: f32[8,256], index: 0, kind: input, shape index: {}, may-alias: {0,6}]   ;;  %s373_s4 = inlined_call_operand.vmem [shape: f32[16,192], index: 4, kind: input, shape index: {}, may-alias: {4,8}]   ;;  %s374_s2 = inlined_call_operand.vmem [shape: f32[12,32], index: 2, kind: input, shape index: {}, may-alias: {2,7}]   ;;  %s375_s3 = inlined_call_operand.vmem [shape: f32[2,6,32], index: 3, kind: input, shape index: {}]   ;;  %s376_s1 = inlined_call_operand.vmem [shape: f32[2,4,256], index: 1, kind: input, shape index: {}]   ;;  %s377_s5 = inlined_call_operand.vmem [shape: f32[2,8,192], index: 5, kind: input, shape index: {}]   ;;  %s378_s7 = inlined_call_operand.vmem [shape: f32[12,32], index: 7, kind: output, shape index: {1}, may-alias: {2,7}]   ;;  %s379_s8 = inlined_call_operand.vmem [shape: f32[16,192], index: 8, kind: output, shape index: {2}, may-alias: {4,8}]   ;;  %s380_s6 = inlined_call_operand.vmem [shape: f32[8,256], index: 6, kind: output, shape index: {0}, may-alias: {0,6}]  }
   0x1   :  { %v26_v0 = vld [vmem:[%s372_s0] sm:$0xff]  ;;  %v27_v1 = vld [vmem:[%s372_s0 + $0x8] sm:$0xff]  ;;  %v118_v7 = vld [vmem:[%s373_s4 + $0x10] sm:$0xff]  ;;  %vm50_vm4 = vcmask 1043456  }
   0x2   :  { %v116_v2 = vld [vmem:[%s373_s4] sm:$0xff]  ;;  %v28_v3 = vadd.f32 %v27_v1, %v26_v0  ;;  %v117_v4 = vld [vmem:[%s373_s4 + $0x8] sm:$0xff]  ;;  %v119_v8 = vld [vmem:[%s373_s4 + $0x18] sm:$0xff] }
   0x3   :  { %v68_v5 = vld [vmem:[%s374_s2] sm:$0xff]  ;;  %v121_v6 = vsel %vm120_vm0, %v117_v4, 0.0  ;;  %v125_v10 = vsel %vm120_vm0, %v119_v8, 0.0  ;;  %v69_v13 = vld [vmem:[%s374_s2 + $0x8] sm:$0xf] }
   0x4   :  { %29 = vadd.xlane.f32.xlu1 %v28_v3  ;;  %v122_v9 = vadd.f32 %v121_v6, %v116_v2  ;;  %v71_v11 = vsel %vm70_vm1, %v68_v5, 0.0  ;;  %v126_v12 = vadd.f32 %v125_v10, %v118_v7  ;;  %v75_v14 = vsel %vm74_vm2, %v69_v13, 0.0  ;;  %v96_v56 = vld [vmem:[%s375_s3] sm:$0x3f]  ;;  %v187_v58 = vld [vmem:[%s375_s3 + $0x8] sm:$0x3f] }
   0x5   :  { %v100_v60 = vrot.slane %v96_v56, 2  ;;  %v105_v62 = vrot.slane %v187_v58, 2  ;;  %v153_v10 = vld [vmem:[%s377_s5] sm:$0xff] }
   0x6   :  { %123 = vadd.xlane.f32.xlu0 %v122_v9 }
   0x8   :  { %72 = vadd.xlane.f32.xlu1 %v71_v11  ;;  %v154_v11 = vld [vmem:[%s377_s5 + $0x8] sm:$0xff] }
   0xa   :  { %127 = vadd.xlane.f32.xlu0 %v126_v12 }
   0xe   :  { %76 = vadd.xlane.f32.xlu0 %v75_v14 }
  0x91   :  { %v30_v15 = vpop.xlane.xlu1 %29 }
  0x92   :  { %v31_v25 = vmul.f32 0.00390625, %v30_v15  ;;  %v186_v15 = vld [vmem:[%s376_s1 + $0x8] sm:$0xff] }
  0x93   :  { %v124_v16 = vpop.xlane.xlu0 %123 }
  0x94   :  { %v129_v17 = vmul.f32 0.0052083335, %v124_v16  ;;  %v287_v33 = vsub.f32 %v26_v0, %v31_v25  ;;  %v289_v34 = vsub.f32 %v27_v1, %v31_v25  ;;  %v56_v25 = vcombine.low %v186_v15, %v186_v15 }
  0x95   :  { %v73_v18 = vpop.xlane.xlu1 %72 }
  0x96   :  { %v277_v19 = vsub.f32 %v117_v4, %v129_v17  ;;  %v78_v20 = vmul.f32 0.03125, %v73_v18  ;;  %v279_v21 = vsub.f32 %v116_v2, %v129_v17  ;;  %v34_v40 = vmul.f32 %v287_v33, %v287_v33  ;;  %v188_v17 = vld [vmem:[%s377_s5 + $0x10] sm:$0xff]  ;;  %v189_v18 = vld [vmem:[%s377_s5 + $0x18] sm:$0xff] }
  0x97   :  { %v128_v22 = vpop.xlane.xlu0 %127  ;;  %v35_v41 = vmul.f32 %v289_v34, %v289_v34  ;;  %v103_v2 = vsel %vm102_vm3, %v96_v56, %v100_v60 }
  0x98   :  { %v80_v23 = vsub.f32 %v68_v5, %v78_v20  ;;  %v136_v24 = vmul.f32 %v277_v19, %v277_v19  ;;  %v130_v26 = vmul.f32 0.0052083335, %v128_v22  ;;  %v135_v29 = vmul.f32 %v279_v21, %v279_v21 }
  0x99   :  { %v36_v44 = vadd.f32 %v35_v41, %v34_v40  ;;  %v107_v5 = vsel %vm102_vm3, %v187_v58, %v105_v62 }
  0x9a   :  { %v82_v27 = vmul.f32 %v80_v23, %v80_v23  ;;  %v139_v32 = vsel %vm120_vm0, %v136_v24, 0.0  ;;  %v291_v35 = vsub.f32 %v119_v8, %v130_v26  ;;  %v297_v39 = vsub.f32 %v118_v7, %v130_v26  ;;  %v42_v8 = vld [vmem:[%s376_s1] sm:$0xff] }
  0x9b   :  { %v77_v28 = vpop.xlane.xlu0 %76  ;;  %v140_v37 = vadd.f32 %v139_v32, %v135_v29  ;;  %v46_v20 = vcombine.high %v42_v8, %v42_v8  ;;  %v48_v22 = vcombine.low %v42_v8, %v42_v8  ;;  %v54_v24 = vcombine.high %v186_v15, %v186_v15 }
  0x9c   :  { %v79_v30 = vmul.f32 0.03125, %v77_v28  ;;  %v84_v31 = vsel %vm70_vm1, %v82_v27, 0.0  ;;  %v138_v43 = vmul.f32 %v291_v35, %v291_v35  ;;  %v137_v45 = vmul.f32 %v297_v39, %v297_v39 }
  0x9d   :  { %85 = vadd.xlane.f32.xlu0 %v84_v31  ;;  %v52_v31 = vsel %vm50_vm4, %v46_v20, %v42_v8  ;;  %v59_v40 = vsel %vm50_vm4, %v54_v24, %v186_v15 }
  0x9e   :  { %v293_v36 = vsub.f32 %v69_v13, %v79_v30  ;;  %v143_v46 = vsel %vm120_vm0, %v138_v43, 0.0  ;;  %v51_v30 = vsel %vm50_vm4, %v42_v8, %v48_v22 }
  0x9f   :  { %v144_v47 = vadd.f32 %v143_v46, %v137_v45 }
  0xa0   :  { %v83_v38 = vmul.f32 %v293_v36, %v293_v36 }
  0xa1   :  { %141 = vadd.xlane.f32.xlu0 %v140_v37 }
  0xa2   :  { %v87_v42 = vsel %vm74_vm2, %v83_v38, 0.0  ;;  %v58_v38 = vsel %vm50_vm4, %v186_v15, %v56_v25 }
  0xa3   :  { %88 = vadd.xlane.f32.xlu1 %v87_v42 }
  0xa7   :  { %37 = vadd.xlane.f32.xlu1 %v36_v44 }
  0xab   :  { %145 = vadd.xlane.f32.xlu1 %v144_v47 }
 0x12a   :  { %v86_v48 = vpop.xlane.xlu0 %85 }
 0x12b   :  { %v90_v49 = vmul.f32 0.03125, %v86_v48 }
 0x12d   :  { %v92_v50 = vadd.f32 1e-05, %v90_v49 }
 0x12e   :  { %v142_v51 = vpop.xlane.xlu0 %141 }
 0x12f   :  { %194 = vrsqrt.f32 %v92_v50  ;;  %v147_v52 = vmul.f32 0.0052083335, %v142_v51 }
 0x130   :  { %v89_v53 = vpop.xlane.xlu1 %88 }
 0x131   :  { %v149_v54 = vadd.f32 0.01, %v147_v52  ;;  %v91_v55 = vmul.f32 0.03125, %v89_v53 }
 0x133   :  { %196 = vrsqrt.f32 %v149_v54  ;;  %v93_v57 = vadd.f32 1e-05, %v91_v55 }
 0x134   :  { %v38_v59 = vpop.xlane.xlu1 %37 }
 0x135   :  { %198 = vrsqrt.f32 %v93_v57  ;;  %v39_v61 = vmul.f32 0.00390625, %v38_v59 }
 0x137   :  { %v40_v63 = vadd.f32 1e-05, %v39_v61 }
 0x138   :  { %v146_v0 = vpop.xlane.xlu1 %145 }
 0x139   :  { %v195_v1 = vpop.eup %194  ;;  %200 = vrsqrt.f32 %v40_v63  ;;  %v148_v3 = vmul.f32 0.0052083335, %v146_v0 }
 0x13a   :  { %v108_v4 = vmul.f32 %v195_v1, %v80_v23 }
 0x13b   :  { %v150_v6 = vadd.f32 0.01, %v148_v3 }
 0x13c   :  { %v110_v7 = vmul.f32 %v108_v4, %v103_v2 }
 0x13d   :  { %v197_v9 = vpop.eup %196  ;;  %202 = vrsqrt.f32 %v150_v6 }
 0x13e   :  { %v112_v12 = vadd.f32 %v110_v7, %v107_v5  ;;  %v158_v13 = vmul.f32 %v197_v9, %v279_v21  ;;  %v159_v14 = vmul.f32 %v197_v9, %v277_v19 }
 0x13f   :  { %v199_v16 = vpop.eup %198 }
 0x140   :  { %114 = vst.msk [vmem:[%s378_s7] sm:$0xff] %vm70_vm1, %v112_v12  ;;  %v162_v19 = vmul.f32 %v158_v13, %v153_v10  ;;  %v163_v21 = vmul.f32 %v159_v14, %v154_v11  ;;  %v109_v23 = vmul.f32 %v199_v16, %v293_v36 }
 0x142   :  { %v166_v26 = vadd.f32 %v188_v17, %v162_v19  ;;  %v167_v27 = vadd.f32 %v189_v18, %v163_v21  ;;  %v111_v28 = vmul.f32 %v109_v23, %v100_v60 }
 0x143   :  { %v201_v29 = vpop.eup %200 }
 0x144   :  { %170 = vst [vmem:[%s379_s8] sm:$0xff] %v166_v26  ;;  %171 = vst.msk [vmem:[%s379_s8 + $0x8] sm:$0xff] %vm120_vm0, %v167_v27  ;;  %v113_v32 = vadd.f32 %v111_v28, %v105_v62  ;;  %v60_v36 = vmul.f32 %v201_v29, %v287_v33  ;;  %v61_v37 = vmul.f32 %v201_v29, %v289_v34 }
 0x146   :  { %115 = vst.msk [vmem:[%s378_s7 + $0x8] sm:$0xf] %vm74_vm2, %v113_v32  ;;  %v62_v41 = vmul.f32 %v60_v36, %v51_v30  ;;  %v63_v42 = vmul.f32 %v61_v37, %v52_v31 }
 0x147   :  { %v203_v43 = vpop.eup %202 }
 0x148   :  { %v64_v44 = vadd.f32 %v62_v41, %v58_v38  ;;  %v65_v45 = vadd.f32 %v63_v42, %v59_v40  ;;  %v160_v46 = vmul.f32 %v203_v43, %v297_v39  ;;  %v161_v33 = vmul.f32 %v203_v43, %v291_v35 }
 0x14a   :  { %66 = vst [vmem:[%s380_s6] sm:$0xff] %v64_v44  ;;  %67 = vst [vmem:[%s380_s6 + $0x8] sm:$0xff] %v65_v45  ;;  %v164_v34 = vmul.f32 %v160_v46, %v153_v10  ;;  %v165_v47 = vmul.f32 %v161_v33, %v154_v11 }
 0x14c   :  { %v168_v48 = vadd.f32 %v188_v17, %v164_v34  ;;  %v169_v49 = vadd.f32 %v189_v18, %v165_v47 }
 0x14e   :  { %172 = vst [vmem:[%s379_s8 + $0x10] sm:$0xff] %v168_v48  ;;  %173 = vst.msk [vmem:[%s379_s8 + $0x18] sm:$0xff] %vm120_vm0, %v169_v49 }

</bundles_post_ra>
